<compile_context>
chip_gen: v5e
topology: v5e:2x2
jax: 0.10.0
libtpu: 0.0.40
codegen_flags: <defaults>
</compile_context>

<pallas_src>
import functools

import jax
import jax.numpy as jnp
from jax import lax
from jax.experimental import pallas as pl
from jax.experimental.pallas import tpu as pltpu


# -----------------------------------------------------------------------------
# Kernel: one (row tile, column chunk) step of a streaming logsumexp
# -----------------------------------------------------------------------------
def _nce_kernel(x_ref, out_ref, m_acc, l_acc, d_acc, *,
                temperature, tm, tn, B, N, mask_cols):
    i = pl.program_id(0)                 # row-tile index      ("parallel")
    j = pl.program_id(1)                 # column-chunk index  ("arbitrary", last)
    nj = pl.num_programs(1)
    inv_t = jnp.float32(1.0 / temperature)

    # Reset the per-row-tile streaming state on the first column chunk.
    @pl.when(j == 0)
    def _():
        m_acc[...] = jnp.full_like(m_acc, -jnp.inf)
        l_acc[...] = jnp.zeros_like(l_acc)
        d_acc[...] = jnp.zeros_like(d_acc)

    x = x_ref[...]                       # (tm, tn), raw dtype (bf16 stays narrow)

    row_g = lax.broadcasted_iota(jnp.int32, (tm, 1), 0) + i * tm    # global rows
    col_g = lax.broadcasted_iota(jnp.int32, (tm, tn), 1) + j * tn   # global cols

    if mask_cols:
        # Padded columns of the last chunk must never leak into a valid row's
        # logsumexp; -inf contributes exp() == 0.  (Padded *rows* may still
        # carry garbage/NaN — they are discarded by a selecting where below.)
        x = jnp.where(col_g < N, x, jnp.array(-jnp.inf, dtype=x.dtype))

    # --- online logsumexp over column chunks (1/T folded into exp args) ------
    m_old = m_acc[...]
    m_new = jnp.maximum(
        m_old, jnp.max(x, axis=-1, keepdims=True).astype(jnp.float32))
    corr = jnp.exp((m_old - m_new) * inv_t)             # == 0 on the first chunk
    p = jnp.exp((x.astype(jnp.float32) - m_new) * inv_t)
    l_acc[...] = corr * l_acc[...] + jnp.sum(p, axis=-1, keepdims=True)
    m_acc[...] = m_new

    # --- diagonal x[r, r]: only on chunks intersecting the diagonal band -----
    diag_lo = i * tm
    chunk_lo = j * tn

    @pl.when(jnp.logical_and(diag_lo < chunk_lo + tn, chunk_lo < diag_lo + tm))
    def _():
        hit = (col_g == row_g)                          # at most one hit per row
        d_acc[...] += jnp.sum(jnp.where(hit, x.astype(jnp.float32), 0.0),
                              axis=-1, keepdims=True)

    # --- finalize this row tile on its last column chunk ---------------------
    @pl.when(j == nj - 1)
    def _():
        lse = jnp.log(l_acc[...]) + m_acc[...] * inv_t              # (tm, 1)
        per_row = jnp.where(row_g < B, lse - d_acc[...] * inv_t, 0.0)
        out_ref[...] = jnp.sum(per_row, axis=0, keepdims=True).reshape(1, 1, 1)


# -----------------------------------------------------------------------------
# Tiling heuristics / wrapper
# -----------------------------------------------------------------------------
_ROW_TARGET = 512     # >=512-tall tiles ~85% of HBM roofline (measured)
_COL_TARGET = 1024    # column-chunk width for the streaming logsumexp


def _round_up(x, m):
    return ((x + m - 1) // m) * m


def _vmem_capacity_bytes():
    """Per-generation VMEM (128 MiB v5e/v6e, 64 MiB v7x); conservative fallback."""
    try:
        cap = int(pltpu.get_tpu_info().vmem_capacity_bytes)
        if cap > 0:
            return cap
    except Exception:
        pass
    return 64 * 1024 * 1024               # v7x-safe default


def _pick_tiles(B, N, itemsize, vmem_budget):
    sub = max(8, 32 // itemsize)          # sublane multiple: 8 f32 / 16 bf16
    # Column chunk (lane dim): full width for small N, else 1024-lane chunks so
    # the VMEM working set is tm*tn instead of tm*N (keeps tm large on v7x).
    tn = N if N <= _COL_TARGET else _COL_TARGET

    # Row tile: ~512 rows, sublane-aligned, and always >= 2 tiles when B allows
    # so dimension_semantics=("parallel", ...) can feed both v7x TensorCores.
    if B <= sub:
        tm = B                            # equals the full dim -> always legal
    else:
        n_tiles = max(2, pl.cdiv(B, _ROW_TARGET))
        tm = min(B, _round_up(pl.cdiv(B, n_tiles), sub))

    # Safety valve: shrink the row tile if the pipelined working set (triple-
    # buffered input chunk + in-register f32 temporaries) would blow the budget.
    def working_set(tm_, tn_):
        return 3 * tm_ * tn_ * itemsize + 3 * tm_ * tn_ * 4 + 3 * tm_ * 4

    while tm > sub and working_set(tm, tn) > vmem_budget:
        tm = max(sub, ((tm // 2) // sub) * sub)
    return tm, tn


def _input_spec(tm, tn, num_col_chunks):
    index_map = lambda i, j: (i, j)
    if num_col_chunks >= 3:
        # Several small per-step DMAs per row tile: a 3rd buffer hides more of
        # the fixed ~0.35us per-step latency and keeps HBM saturated.
        try:
            return pl.BlockSpec((tm, tn), index_map, pipeline_mode=pl.Buffered(3))
        except TypeError:                 # BlockSpec without pipeline_mode
            pass
    return pl.BlockSpec((tm, tn), index_map)


def _nce_ref(x, temperature=0.05):
    """Pure-JAX reference: F.cross_entropy(x / T, arange(B), reduction='mean')."""
    xs = x.astype(jnp.float32) / temperature
    lse = jax.scipy.special.logsumexp(xs, axis=-1)
    diag = jnp.diagonal(xs)
    return jnp.mean(lse - diag)


def nce_loss(x, temperature=0.05, *, block_rows=None, block_cols=None):
    """x: [B, N] logits with B <= N (targets = arange(B)). Returns scalar f32."""
    B, N = x.shape
    assert B <= N, "targets=arange(B) requires x.shape[0] <= x.shape[1]"
    itemsize = jnp.dtype(x.dtype).itemsize
    sub = max(8, 32 // itemsize)

    cap = _vmem_capacity_bytes()
    vmem_budget = max(cap // 2, 16 * 1024 * 1024)
    vmem_limit = int(min(100 * 1024 * 1024,
                         max(32 * 1024 * 1024, (cap * 3) // 4)))

    tm, tn = _pick_tiles(B, N, itemsize, vmem_budget)
    if block_rows is not None:
        tm = int(block_rows)
        assert tm == B or (tm >= sub and tm % sub == 0), (
            "block_rows must be a multiple of the sublane count or equal B")
    if block_cols is not None:
        tn = int(block_cols)
        assert tn == N or (tn >= 128 and tn % 128 == 0), (
            "block_cols must be a multiple of 128 or equal N")

    num_row = pl.cdiv(B, tm)
    num_col = pl.cdiv(N, tn)
    mask_cols = (N % tn) != 0

    kernel = functools.partial(
        _nce_kernel, temperature=float(temperature),
        tm=tm, tn=tn, B=B, N=N, mask_cols=mask_cols)

    partial_sums = pl.pallas_call(
        kernel,
        out_shape=jax.ShapeDtypeStruct((num_row, 1, 1), jnp.float32),
        grid_spec=pltpu.PrefetchScalarGridSpec(
            num_scalar_prefetch=0,
            grid=(num_row, num_col),
            in_specs=[_input_spec(tm, tn, num_col)],
            out_specs=pl.BlockSpec((1, 1, 1), lambda i, j: (i, 0, 0)),
            scratch_shapes=[
                pltpu.VMEM((tm, 1), jnp.float32),   # running max
                pltpu.VMEM((tm, 1), jnp.float32),   # running sum of exp
                pltpu.VMEM((tm, 1), jnp.float32),   # diagonal accumulator
            ],
        ),
        compiler_params=pltpu.CompilerParams(
            # Row tiles are independent -> shardable across v7x's two TCs;
            # column chunks are the (streaming) reduction axis.
            dimension_semantics=("parallel", "arbitrary"),
            vmem_limit_bytes=vmem_limit,
        ),
        cost_estimate=pl.CostEstimate(
            flops=int(5 * B * N),
            transcendentals=int(B * N),
            bytes_accessed=int(B * N * itemsize + num_row * 4),
        ),
    )(x)

    # Order-stable f32 reduction of the per-row-tile partial sums -> mean.
    return jnp.sum(partial_sums) / jnp.float32(B)


# -----------------------------------------------------------------------------
# Self-test
# -----------------------------------------------------------------------------
if __name__ == "__main__":
    key = jax.random.PRNGKey(0)
    k1, k2, k3, k4 = jax.random.split(key, 4)
    T = 0.05

    tests = []

    # (1) f32, auto tiling: two 24-row tiles, single full-width column chunk.
    x1 = jax.random.normal(k1, (48, 160), dtype=jnp.float32)
    tests.append((nce_loss(x1, T), _nce_ref(x1, T), 1e-4))

    # (2) f32, forced multi-chunk streaming logsumexp with a padded last column
    #     chunk AND a padded last row tile (3 col chunks of 128, row tiles of 32).
    x2 = jax.random.normal(k2, (72, 300), dtype=jnp.float32)
    tests.append((nce_loss(x2, T, block_rows=32, block_cols=128),
                  _nce_ref(x2, T), 1e-4))

    # (3) bf16 logits streamed narrow from HBM; kernel upcasts in-register.
    x3 = jax.random.normal(k3, (64, 256), dtype=jnp.bfloat16)
    tests.append((nce_loss(x3, T, block_cols=128), _nce_ref(x3, T), 2e-3))

    # (4) tiny square input (B == N), small sublane-sized row tiles.
    x4 = jax.random.normal(k4, (16, 16), dtype=jnp.float32)
    tests.append((nce_loss(x4, T), _nce_ref(x4, T), 1e-4))

    for got, want, tol in tests:
        got = jax.block_until_ready(got)
        want = jax.block_until_ready(want)
        assert jnp.allclose(got, want, rtol=tol, atol=tol), (got, want)

    print("KERNEL_OK")
</pallas_src>

<mosaic_0001>
module attributes {stable_mosaic.version = 11 : i64} {
  func.func @_nce_kernel(%arg0: i32, %arg1: i32, %arg2: memref<24x160xf32, #tpu.memory_space<vmem>>, %arg3: memref<1x1x1xf32, #tpu.memory_space<vmem>>, %arg4: memref<24x1xf32, #tpu.memory_space<vmem>>, %arg5: memref<24x1xf32, #tpu.memory_space<vmem>>, %arg6: memref<24x1xf32, #tpu.memory_space<vmem>>) attributes {dimension_semantics = [#tpu.dimension_semantics<parallel>, #tpu.dimension_semantics<arbitrary>], iteration_bounds = array<i64: 2, 1>, scalar_prefetch = 0 : i64, scratch_operands = 3 : i64, tpu.core_type = #tpu.core_type<tc>, window_params = [{transform_indices = @transform_0, window_bounds = array<i64: 24, 160>}, {transform_indices = @transform_1, window_bounds = array<i64: 1, 1, 1>}]} {
    %c0_i32 = arith.constant 0 : i32
    %0 = arith.cmpi eq, %arg1, %c0_i32 : i32
    %1 = arith.extui %0 : i1 to i32
    %c0_i32_0 = arith.constant 0 : i32
    %2 = arith.cmpi ne, %1, %c0_i32_0 : i32
    scf.if %2 {
      %cst_21 = arith.constant 0xFF800000 : f32
      %44 = vector.broadcast %cst_21 : f32 to vector<24x1xf32>
      %c0_22 = arith.constant 0 : index
      %c0_23 = arith.constant 0 : index
      %45 = vector.load %arg4[%c0_22, %c0_23] : memref<24x1xf32, #tpu.memory_space<vmem>>, vector<24x1xf32>
      tpu.vector_store %arg4[%c0_22, %c0_23], %44 {strides = array<i32>} : memref<24x1xf32, #tpu.memory_space<vmem>>, vector<24x1xf32>,
      %cst_24 = arith.constant 0.000000e+00 : f32
      %46 = vector.broadcast %cst_24 : f32 to vector<24x1xf32>
      %c0_25 = arith.constant 0 : index
      %c0_26 = arith.constant 0 : index
      %47 = vector.load %arg5[%c0_25, %c0_26] : memref<24x1xf32, #tpu.memory_space<vmem>>, vector<24x1xf32>
      tpu.vector_store %arg5[%c0_25, %c0_26], %46 {strides = array<i32>} : memref<24x1xf32, #tpu.memory_space<vmem>>, vector<24x1xf32>,
      %cst_27 = arith.constant 0.000000e+00 : f32
      %48 = vector.broadcast %cst_27 : f32 to vector<24x1xf32>
      %c0_28 = arith.constant 0 : index
      %c0_29 = arith.constant 0 : index
      %49 = vector.load %arg6[%c0_28, %c0_29] : memref<24x1xf32, #tpu.memory_space<vmem>>, vector<24x1xf32>
      tpu.vector_store %arg6[%c0_28, %c0_29], %48 {strides = array<i32>} : memref<24x1xf32, #tpu.memory_space<vmem>>, vector<24x1xf32>,
    } else {
    }
    %c0 = arith.constant 0 : index
    %c0_1 = arith.constant 0 : index
    %3 = vector.load %arg2[%c0, %c0_1] : memref<24x160xf32, #tpu.memory_space<vmem>>, vector<24x160xf32>
    %4 = tpu.iota {dimensions = array<i32: 0>} : vector<24x1xi32>
    %c24_i32 = arith.constant 24 : i32
    %5 = arith.muli %arg0, %c24_i32 : i32
    %6 = vector.broadcast %5 : i32 to vector<24x1xi32>
    %7 = arith.addi %4, %6 : vector<24x1xi32>
    %8 = tpu.iota {dimensions = array<i32: 1>} : vector<24x160xi32>
    %c160_i32 = arith.constant 160 : i32
    %9 = arith.muli %arg1, %c160_i32 : i32
    %10 = vector.broadcast %9 : i32 to vector<24x160xi32>
    %11 = arith.addi %8, %10 : vector<24x160xi32>
    %c0_2 = arith.constant 0 : index
    %c0_3 = arith.constant 0 : index
    %12 = vector.load %arg4[%c0_2, %c0_3] : memref<24x1xf32, #tpu.memory_space<vmem>>, vector<24x1xf32>
    %cst = arith.constant dense<0xFF800000> : vector<24xf32>
    %13 = vector.multi_reduction <maximumf>, %3, %cst [1] : vector<24x160xf32> to vector<24xf32>
    %14 = vector.shape_cast %13 : vector<24xf32> to vector<24x1xf32>
    %15 = arith.maximumf %12, %14 : vector<24x1xf32>
    %16 = arith.subf %12, %15 : vector<24x1xf32>
    %cst_4 = arith.constant 2.000000e+01 : f32
    %17 = vector.broadcast %cst_4 : f32 to vector<24x1xf32>
    %18 = arith.mulf %16, %17 : vector<24x1xf32>
    %19 = math.exp %18 : vector<24x1xf32>
    %20 = vector.broadcast %15 : vector<24x1xf32> to vector<24x160xf32>
    %21 = arith.subf %3, %20 : vector<24x160xf32>
    %cst_5 = arith.constant 2.000000e+01 : f32
    %22 = vector.broadcast %cst_5 : f32 to vector<24x160xf32>
    %23 = arith.mulf %21, %22 : vector<24x160xf32>
    %24 = math.exp %23 : vector<24x160xf32>
    %c0_6 = arith.constant 0 : index
    %c0_7 = arith.constant 0 : index
    %25 = vector.load %arg5[%c0_6, %c0_7] : memref<24x1xf32, #tpu.memory_space<vmem>>, vector<24x1xf32>
    %26 = arith.mulf %19, %25 : vector<24x1xf32>
    %cst_8 = arith.constant dense<0.000000e+00> : vector<24xf32>
    %27 = vector.multi_reduction <add>, %24, %cst_8 [1] : vector<24x160xf32> to vector<24xf32>
    %28 = vector.shape_cast %27 : vector<24xf32> to vector<24x1xf32>
    %29 = arith.addf %26, %28 : vector<24x1xf32>
    %c0_9 = arith.constant 0 : index
    %c0_10 = arith.constant 0 : index
    %30 = vector.load %arg5[%c0_9, %c0_10] : memref<24x1xf32, #tpu.memory_space<vmem>>, vector<24x1xf32>
    tpu.vector_store %arg5[%c0_9, %c0_10], %29 {strides = array<i32>} : memref<24x1xf32, #tpu.memory_space<vmem>>, vector<24x1xf32>,
    %c0_11 = arith.constant 0 : index
    %c0_12 = arith.constant 0 : index
    %31 = vector.load %arg4[%c0_11, %c0_12] : memref<24x1xf32, #tpu.memory_space<vmem>>, vector<24x1xf32>
    tpu.vector_store %arg4[%c0_11, %c0_12], %15 {strides = array<i32>} : memref<24x1xf32, #tpu.memory_space<vmem>>, vector<24x1xf32>,
    %c24_i32_13 = arith.constant 24 : i32
    %32 = arith.muli %arg0, %c24_i32_13 : i32
    %c160_i32_14 = arith.constant 160 : i32
    %33 = arith.muli %arg1, %c160_i32_14 : i32
    %c160_i32_15 = arith.constant 160 : i32
    %34 = arith.addi %33, %c160_i32_15 : i32
    %35 = arith.cmpi slt, %32, %34 : i32
    %c24_i32_16 = arith.constant 24 : i32
    %36 = arith.addi %32, %c24_i32_16 : i32
    %37 = arith.cmpi slt, %33, %36 : i32
    %38 = arith.andi %35, %37 : i1
    %39 = arith.extui %38 : i1 to i32
    %c0_i32_17 = arith.constant 0 : i32
    %40 = arith.cmpi ne, %39, %c0_i32_17 : i32
    scf.if %40 {
      %44 = vector.broadcast %7 : vector<24x1xi32> to vector<24x160xi32>
      %45 = arith.cmpi eq, %11, %44 : vector<24x160xi32>
      %c0_21 = arith.constant 0 : index
      %c0_22 = arith.constant 0 : index
      %46 = vector.load %arg6[%c0_21, %c0_22] : memref<24x1xf32, #tpu.memory_space<vmem>>, vector<24x1xf32>
      %cst_23 = arith.constant 0.000000e+00 : f32
      %47 = vector.broadcast %cst_23 : f32 to vector<24x160xf32>
      %48 = arith.select %45, %3, %47 : vector<24x160xi1>, vector<24x160xf32>
      %cst_24 = arith.constant dense<0.000000e+00> : vector<24xf32>
      %49 = vector.multi_reduction <add>, %48, %cst_24 [1] : vector<24x160xf32> to vector<24xf32>
      %50 = vector.shape_cast %49 : vector<24xf32> to vector<24x1xf32>
      %51 = arith.addf %46, %50 : vector<24x1xf32>
      %c0_25 = arith.constant 0 : index
      %c0_26 = arith.constant 0 : index
      %52 = vector.load %arg6[%c0_25, %c0_26] : memref<24x1xf32, #tpu.memory_space<vmem>>, vector<24x1xf32>
      tpu.vector_store %arg6[%c0_25, %c0_26], %51 {strides = array<i32>} : memref<24x1xf32, #tpu.memory_space<vmem>>, vector<24x1xf32>,
    } else {
    }
    %c0_i32_18 = arith.constant 0 : i32
    %41 = arith.cmpi eq, %arg1, %c0_i32_18 : i32
    %42 = arith.extui %41 : i1 to i32
    %cst_19 = arith.constant 2.000000e+01 : f32
    %c0_i32_20 = arith.constant 0 : i32
    %43 = arith.cmpi ne, %42, %c0_i32_20 : i32
    scf.if %43 {
      %c0_21 = arith.constant 0 : index
      %c0_22 = arith.constant 0 : index
      %44 = vector.load %arg5[%c0_21, %c0_22] : memref<24x1xf32, #tpu.memory_space<vmem>>, vector<24x1xf32>
      %45 = math.log %44 : vector<24x1xf32>
      %c0_23 = arith.constant 0 : index
      %c0_24 = arith.constant 0 : index
      %46 = vector.load %arg4[%c0_23, %c0_24] : memref<24x1xf32, #tpu.memory_space<vmem>>, vector<24x1xf32>
      %47 = vector.broadcast %cst_19 : f32 to vector<24x1xf32>
      %48 = arith.mulf %46, %47 : vector<24x1xf32>
      %49 = arith.addf %45, %48 : vector<24x1xf32>
      %c48_i32 = arith.constant 48 : i32
      %50 = vector.broadcast %c48_i32 : i32 to vector<24x1xi32>
      %51 = arith.cmpi slt, %7, %50 : vector<24x1xi32>
      %c0_25 = arith.constant 0 : index
      %c0_26 = arith.constant 0 : index
      %52 = vector.load %arg6[%c0_25, %c0_26] : memref<24x1xf32, #tpu.memory_space<vmem>>, vector<24x1xf32>
      %53 = vector.broadcast %cst_19 : f32 to vector<24x1xf32>
      %54 = arith.mulf %52, %53 : vector<24x1xf32>
      %55 = arith.subf %49, %54 : vector<24x1xf32>
      %cst_27 = arith.constant 0.000000e+00 : f32
      %56 = vector.broadcast %cst_27 : f32 to vector<24x1xf32>
      %57 = arith.select %51, %55, %56 : vector<24x1xi1>, vector<24x1xf32>
      %cst_28 = arith.constant dense<0.000000e+00> : vector<1xf32>
      %58 = vector.multi_reduction <add>, %57, %cst_28 [0] : vector<24x1xf32> to vector<1xf32>
      %59 = vector.shape_cast %58 : vector<1xf32> to vector<1x1xf32>
      %60 = vector.shape_cast %59 : vector<1x1xf32> to vector<1x1x1xf32>
      %c0_29 = arith.constant 0 : index
      %c0_30 = arith.constant 0 : index
      %c0_31 = arith.constant 0 : index
      %61 = vector.load %arg3[%c0_29, %c0_30, %c0_31] : memref<1x1x1xf32, #tpu.memory_space<vmem>>, vector<1x1x1xf32>
      tpu.vector_store %arg3[%c0_29, %c0_30, %c0_31], %60 {strides = array<i32>} : memref<1x1x1xf32, #tpu.memory_space<vmem>>, vector<1x1x1xf32>,
    } else {
    }
    return
  }
  func.func @transform_0(%arg0: i32, %arg1: i32) -> (i32, i32) {
    %c0_i32 = arith.constant 0 : i32
    return %arg0, %arg1 : i32, i32
  }
  func.func @transform_1(%arg0: i32, %arg1: i32) -> (i32, i32, i32) {
    %c0_i32 = arith.constant 0 : i32
    %c0_i32_0 = arith.constant 0 : i32
    %c0_i32_1 = arith.constant 0 : i32
    return %arg0, %c0_i32, %c0_i32_0 : i32, i32, i32
  }
}

</mosaic_0001>

<bundles_post_ra>
// kernel: tpu_custom_call.1
= control target key start
LH: loop header
LB: loop body
LE: loop exit
PB: predicated region body
PF: predicated region fallthrough
CT: control target
= control target key end

     0   :  { %6 = vsyncpa [#allocation6], 0  ;;  %s843_s0 = inlined_call_operand.hbm [shape: f32[48,160], index: 0, kind: input, shape index: {}]   ;;  %s844_s1 = inlined_call_operand.vmem [shape: f32[2,1,1], index: 1, kind: output, shape index: {}]  }
   0x1   :  { %8 = vsyncpa [#allocation6 + $0x1], 0  ;;  %s647_s6 = smov 0   ;;  %s649_s7 = smov 0  }
   0x2   :  { %s651_s8 = smov 0   ;;  %s653_s9 = smov 0  }
   0x3   :  { %s655_s10 = smov 0   ;;  %s657_s11 = smov 0  }
   0x4 LB: > { %s448_s12 = sadd.s32 4294967295, %s630_s11   ;;  %s26_s13 = sadd.s32 1, %s626_s10  ;;  %s630_s11 = sphi %s657_s11, %s14_s11   ;;  %s626_s10 = sphi %s655_s10, %s851_s10   ;;  %s622_s9 = sphi %s653_s9, %s850_s9   ;;  %s618_s8 = sphi %s651_s8, %s849_s8   ;;  %s614_s7 = sphi %s649_s7, %s848_s7   ;;  %s610_s6 = sphi %s647_s6, %s847_s6  }
   0x5   : > { %p28_p0 = scmp.ge.s32.totalorder %s26_s13, 2  ;;  %s35_s14 = sadd.s32 1, %s618_s8 }
   0x6   : > { %p42_p1 = scmp.ne.s32.totalorder %s618_s8, %s614_s7  ;;  %p43_p2 = scmp.eq.s32.totalorder %s630_s11, 0 }
   0x7   : > { %s853_s13 = smov (%p28_p0, %s26_s13), 0  ;;  %p48_p4 = scmp.ne.s32.totalorder %s614_s7, %s610_s6 }
   0x8   : > { %p44_p3 = por %p43_p2, %p42_p1  ;;  %s30_s15 = ssub.s32 %s626_s10, %s853_s13 }
   0x9   : > { %p49_p5 = scmp.eq.s32.totalorder %s448_s12, 0  ;;  %p33_p6 = scmp.eq.s32.totalorder %s30_s15, 0 }
   0xa   : > { %p469_p8 = scmp.lt.s32.totalorder %s630_s11, 2  ;;  %s98_s18 = sand.u32 1, %s618_s8  }
   0xb   : > { %p686_p7 = por %p49_p5, %p48_p4  ;;  %s460_s19 = smul.u32 48, %s626_s10 }
   0xc   : > { %s692_s17 = scalar_select %p33_p6, %s618_s8, %s35_s14  }
   0xd   : > { %s461_s20 = smul.u32 48, %s98_s18  ;;  %s110_s23 = scalar_lea.hbm %s843_s0, %s460_s19 }
   0xe   : > { %p466_p9 = pnand %p469_p8, %p44_p3  ;;  %s111_s24 = sshll.u32 %s110_s23, 4  ;;  %s112_s24 = int_to_ptr.hbm [resolvable:$true] %s111_s24 }
   0xf   : > { %s102_s25 = scalar_lea.vmem [#allocation5], %s461_s20  ;;  %s99_s27 = scalar_lea.sflag [#allocation6], %s98_s18 }
  0x10   : > { %s113_s26 = sshll.u32 %s102_s25, 4  ;;  %s632_s28 = smov 256   ;;  %s114_s26 = int_to_ptr.vmem [resolvable:$true] %s113_s26 }
  0x11   : > { %s633_s29 = smov 16   ;;  %p454_p10 = scmp.ge.s32.totalorder %s630_s11, 1 }
  0x12   : > { %468 = dma.hbm_to_vmem [thread:$0]  (!%p466_p9), %s112_s24, 768, %s114_s26, %s99_s27, %s632_s28, %s632_s28, %s633_s29  }
  0x13   : > { %p121_p11 = scmp.lt.s32.totalorder %s630_s11, 3 }
  0x15   : > { %p122_p12 = pnand %p454_p10, %p121_p11 }
  0x16   : > { %s127_s30 = sand.u32 (!%p122_p12), 1, %s614_s7  }
  0x17   : > { %125 = sbr.rel (%p122_p12) target bundleno = 579 (0x243), region = 24  ;;  %s128_s3 = scalar_lea.sflag (!%p122_p12), [#allocation6], %s127_s30 }
  0x18   : > { %s462_s2 = smul.u32 (!%p122_p12), 48, %s127_s30 }
  0x1a   : > { %s131_s4 = scalar_lea.vmem (!%p122_p12), [#allocation5], %s462_s2 }
  0x1c   : > { %605 = dma.done.wait (%p686_p7), %s128_s3, 768  }
  0x1d   : > { %607 = vsyncadd (%p686_p7), %s128_s3, 4294966528  ;;  %vm158_vm0 = vcmask 7168   ;;  %v634_v0 = vmov -inf   ;;  %vm193_vm1 = vcmask 261120   ;;  %v709_v1 = vld [vmem:[%s131_s4] sm:$0xff]  ;;  %v711_v2 = vld [vmem:[%s131_s4 + $0x8] sm:$0xff]  ;;  %v174_v62 = vlaneseq }
  0x1e   : > { %159 = vst.msk [vmem:[#allocation2] sm:$0xff] %vm158_vm0, %v634_v0  ;;  %v194_v3 = vsel %vm193_vm1, %v711_v2, -inf  ;;  %v715_v4 = vld [vmem:[%s131_s4 + $0x20] sm:$0xff]  ;;  %v717_v5 = vld [vmem:[%s131_s4 + $0x28] sm:$0xff]  ;;  %v720_v7 = vld [vmem:[%s131_s4 + $0x18] sm:$0xff]  ;;  %v635_v13 = vmov 0  }
  0x1f   : > { %160 = vst.msk [vmem:[#allocation2 + $0x8] sm:$0xff] %vm158_vm0, %v634_v0  ;;  %v195_v6 = vmax.f32 %v709_v1, %v194_v3  ;;  %v202_v8 = vsel %vm193_vm1, %v717_v5, -inf  ;;  %v725_v10 = vld [vmem:[%s131_s4 + $0x10] sm:$0xff]  ;;  %v198_v11 = vsel %vm193_vm1, %v720_v7, -inf  ;;  %523 = vset.pattern.permute.xlu1 %v635_v13  ;;  %524 = vset.pattern.permute.xlu2 %v635_v13  ;;  %v636_v14 = vmov 0.0   ;;  %s178_s5 = smul.u32 24, %s622_s9 }
  0x20   : > { %161 = vst.msk [vmem:[#allocation2 + $0x10] sm:$0xff] %vm158_vm0, %v634_v0  ;;  %v203_v9 = vmax.f32 %v715_v4, %v202_v8  ;;  %v199_v12 = vmax.f32 %v725_v10, %v198_v11  ;;  %525 = vset.pattern.permute.xlu0 %v635_v13  ;;  %p151_p13 = scmp.lt.s32.totalorder %s622_s9, 1  ;;  %v175_v63 = vshrl.u32 %v174_v62, 7 }
  0x21   : > { %196 = vmax.xlane.f32.xlu0 %v195_v6  ;;  %163 = vst.msk [vmem:[#allocation3 + $0x8] sm:$0xff] %vm158_vm0, %v636_v14  ;;  %s290_s6 = sadd.s32 24, %s178_s5  ;;  %p289_p0 = scmp.lt.s32.totalorder %s178_s5, 160  ;;  %v184_v6 = vand.u32 127, %v174_v62  ;;  %v179_v8 = vstv %s178_s5 }
  0x22   : > { %204 = vmax.xlane.f32.xlu1 %v203_v9  ;;  %165 = vst.msk [vmem:[#allocation4] sm:$0xff] %vm158_vm0, %v636_v14  ;;  %s855_s9 = smov (!%p151_p13, %s622_s9), 1  ;;  %p455_p1 = scmp.gt.s32.totalorder %s290_s6, 0  ;;  %v176_v0 = vadd.s32 8, %v175_v63  ;;  %v177_v3 = vadd.s32 16, %v175_v63  ;;  %v779_v9 = vadd.s32 %v179_v8, %v175_v63 }
  0x23   : > { %166 = vst.msk [vmem:[#allocation4 + $0x8] sm:$0xff] %vm158_vm0, %v636_v14  ;;  %s153_s15 = scalar_lea.vmem %s844_s1, %s855_s9  ;;  %v185_v13 = vadd.s32 128, %v184_v6 }
  0x24   : > { %167 = vst.msk [vmem:[#allocation4 + $0x10] sm:$0xff] %vm158_vm0, %v636_v14  ;;  %p774_p2 = pnand %p455_p1, %p289_p0  ;;  %v781_v11 = vadd.s32 %v179_v8, %v176_v0 }
  0x25   : > { %162 = vst.msk [vmem:[#allocation3] sm:$0xff] %vm158_vm0, %v636_v14  ;;  %v736_v15 = vld [vmem:[#allocation2] sm:$0xff] }
  0x26   : > { %164 = vst.msk [vmem:[#allocation3 + $0x10] sm:$0xff] %vm158_vm0, %v636_v14  ;;  %v191_v23 = vld [vmem:[#allocation2 + $0x8] sm:$0xff] }
  0x27   : > { %v738_v16 = vld [vmem:[#allocation2 + $0x10] sm:$0xff] }
  0x29   : > { %200 = vmax.xlane.f32.xlu0 %v199_v12  ;;  %v783_v12 = vadd.s32 %v179_v8, %v177_v3 }
  0x94   : > { %v197_v17 = vpop.xlane.xlu0 %196 }
  0x95   : > { %v741_v18 = vmax.f32 %v736_v15, %v197_v17  ;;  %v205_v19 = vpop.xlane.xlu1 %204  ;;  %v261_v17 = vld [vmem:[#allocation3 + $0x8] sm:$0xff] }
  0x96   : > { %v744_v20 = vmax.f32 %v738_v16, %v205_v19 }
  0x97   : > { %v209_v21 = vsub.f32 %v736_v15, %v741_v18  ;;  %285 = vst.msk [vmem:[#allocation2] sm:$0xff] %vm158_vm0, %v741_v18  ;;  %223 = vperm.xlu1 %523, %v741_v18   ;;  %v262_v18 = vld [vmem:[#allocation3 + $0x10] sm:$0xff] }
  0x98   : > { %v211_v22 = vsub.f32 %v738_v16, %v744_v20  ;;  %287 = vst.msk [vmem:[#allocation2 + $0x10] sm:$0xff] %vm158_vm0, %v744_v20 }
  0x99   : > { %v212_v19 = vmul.f32 20.0, %v209_v21 }
  0x9c   : > { %v201_v24 = vpop.xlane.xlu0 %200 }
  0x9d   : > { %v207_v25 = vmax.f32 %v191_v23, %v201_v24 }
  0x9f   : > { %v210_v26 = vsub.f32 %v191_v23, %v207_v25  ;;  %286 = vst.msk [vmem:[#allocation2 + $0x8] sm:$0xff] %vm158_vm0, %v207_v25  ;;  %228 = vperm.xlu2 %524, %v207_v25  }
  0xa1   : > { %v213_v60 = vmul.f32 20.0, %v210_v26  ;;  %v215_v26 = vmul.f32 1.442695, %v212_v19 }
  0xa3   : > { %v217_v61 = vmul.f32 1.442695, %v213_v60 }
  0xa7   : > { %233 = vperm.xlu2 %524, %v744_v20  }
  0xf9   : > { %v229_v27 = vpop.permute.xlu2 %228 }
  0xfa   : > { %v238_v28 = vsub.f32 %v725_v10, %v229_v27  ;;  %v239_v29 = vsub.f32 %v720_v7, %v229_v27  ;;  %v214_v27 = vmul.f32 20.0, %v211_v22 }
  0xfc   : > { %v244_v30 = vmul.f32 20.0, %v238_v28  ;;  %v245_v31 = vmul.f32 20.0, %v239_v29  ;;  %v219_v28 = vmul.f32 1.442695, %v214_v27 }
  0xfe   : > { %v252_v32 = vmul.f32 1.442695, %v244_v30  ;;  %v254_v33 = vmul.f32 1.442695, %v245_v31  ;;  %v260_v30 = vld [vmem:[#allocation3] sm:$0xff] }
 0x100   : > { %526 = vpow2.f32 %v252_v32 }
 0x101   : > { %528 = vpow2.f32 %v254_v33  ;;  %v234_v35 = vpop.permute.xlu2 %233 }
 0x102   : > { %v241_v38 = vsub.f32 %v717_v5, %v234_v35  ;;  %v240_v43 = vsub.f32 %v715_v4, %v234_v35 }
 0x104   : > { %v247_v46 = vmul.f32 20.0, %v241_v38  ;;  %v246_v49 = vmul.f32 20.0, %v240_v43 }
 0x106   : > { %v527_v34 = vpop.eup %526  ;;  %v258_v50 = vmul.f32 1.442695, %v247_v46  ;;  %v256_v51 = vmul.f32 1.442695, %v246_v49 }
 0x107   : > { %v529_v36 = vpop.eup %528 }
 0x108   : > { %v270_v37 = vsel %vm193_vm1, %v529_v36, 0.0 }
 0x109   : > { %v224_v39 = vpop.permute.xlu1 %223  ;;  %v271_v40 = vadd.f32 %v527_v34, %v270_v37 }
 0x10a   : > { %v236_v41 = vsub.f32 %v709_v1, %v224_v39  ;;  %v237_v42 = vsub.f32 %v711_v2, %v224_v39 }
 0x10b   : > { %272 = vadd.xlane.f32.xlu2 %v271_v40 }
 0x10c   : > { %v242_v44 = vmul.f32 20.0, %v236_v41  ;;  %v243_v45 = vmul.f32 20.0, %v237_v42 }
 0x10e   : > { %v248_v47 = vmul.f32 1.442695, %v242_v44  ;;  %v250_v48 = vmul.f32 1.442695, %v243_v45 }
 0x110   : > { %530 = vpow2.f32 %v248_v47 }
 0x111   : > { %532 = vpow2.f32 %v250_v48 }
 0x112   : > { %534 = vpow2.f32 %v258_v50 }
 0x113   : > { %536 = vpow2.f32 %v256_v51 }
 0x114   : > { %538 = vpow2.f32 %v217_v61 }
 0x115   : > { %540 = vpow2.f32 %v215_v26 }
 0x116   : > { %v531_v52 = vpop.eup %530  ;;  %542 = vpow2.f32 %v219_v28 }
 0x117   : > { %v533_v53 = vpop.eup %532 }
 0x118   : > { %v266_v54 = vsel %vm193_vm1, %v533_v53, 0.0  ;;  %v535_v56 = vpop.eup %534 }
 0x119   : > { %v267_v55 = vadd.f32 %v531_v52, %v266_v54  ;;  %v537_v57 = vpop.eup %536  ;;  %v274_v58 = vsel %vm193_vm1, %v535_v56, 0.0 }
 0x11a   : > { %v275_v59 = vadd.f32 %v537_v57, %v274_v58  ;;  %v539_v14 = vpop.eup %538 }
 0x11b   : > { %268 = vadd.xlane.f32.xlu0 %v267_v55  ;;  %v264_v23 = vmul.f32 %v539_v14, %v261_v17  ;;  %v541_v29 = vpop.eup %540 }
 0x11c   : > { %v263_v31 = vmul.f32 %v541_v29, %v260_v30  ;;  %v543_v15 = vpop.eup %542 }
 0x11d   : > { %v265_v21 = vmul.f32 %v543_v15, %v262_v18 }
 0x123   : > { %276 = vadd.xlane.f32.xlu0 %v275_v59 }
 0x17e   : > { %v273_v24 = vpop.xlane.xlu2 %272 }
 0x17f   : > { %v279_v25 = vadd.f32 %v273_v24, %v264_v23 }
 0x181   : > { %283 = vst.msk [vmem:[#allocation3 + $0x8] sm:$0xff] %vm158_vm0, %v279_v25 }
 0x18e   : > { %v269_v32 = vpop.xlane.xlu0 %268 }
 0x18f   : > { %v278_v33 = vadd.f32 %v269_v32, %v263_v31 }
 0x191   : > { %282 = vst.msk [vmem:[#allocation3] sm:$0xff] %vm158_vm0, %v278_v33 }
 0x195   : > { %295 = sbr.rel (%p774_p2) target bundleno = 542 (0x21e), region = 36 }
 0x196   : > { %v277_v34 = vpop.xlane.xlu0 %276 }
 0x197   : > { %v280_v35 = vadd.f32 %v277_v34, %v265_v21 }
 0x199   : > { %284 = vst.msk [vmem:[#allocation3 + $0x10] sm:$0xff] %vm158_vm0, %v280_v35 }
 0x19a   : > { %vm296_vm2 = vcmp.eq.s32.totalorder %v184_v6, %v779_v9  ;;  %vm297_vm3 = vcmp.eq.s32.totalorder %v185_v13, %v779_v9  ;;  %vm300_vm4 = vcmp.eq.s32.totalorder %v184_v6, %v783_v12  ;;  %vm301_vm5 = vcmp.eq.s32.totalorder %v185_v13, %v783_v12  ;;  %v304_v42 = vld [vmem:[#allocation4 + $0x10] sm:$0xff]  ;;  %v303_v47 = vld [vmem:[#allocation4 + $0x8] sm:$0xff] }
 0x19b   : > { %v305_v16 = vsel %vm296_vm2, %v709_v1, 0.0  ;;  %v306_v20 = vsel %vm297_vm3, %v711_v2, 0.0  ;;  %v309_v22 = vsel %vm300_vm4, %v715_v4, 0.0  ;;  %v310_v36 = vsel %vm301_vm5, %v717_v5, 0.0  ;;  %v302_v5 = vld [vmem:[#allocation4] sm:$0xff] }
 0x19c   : > { %v311_v37 = vsel %vm193_vm1, %v306_v20, 0.0  ;;  %v319_v38 = vsel %vm193_vm1, %v310_v36, 0.0  ;;  %vm299_vm6 = vcmp.eq.s32.totalorder %v185_v13, %v781_v11  ;;  %vm298_vm7 = vcmp.eq.s32.totalorder %v184_v6, %v781_v11 }
 0x19d   : > { %v312_v39 = vadd.f32 %v311_v37, %v305_v16  ;;  %v320_v40 = vadd.f32 %v319_v38, %v309_v22  ;;  %v308_v41 = vsel %vm299_vm6, %v720_v7, 0.0  ;;  %v307_v1 = vsel %vm298_vm7, %v725_v10, 0.0 }
 0x19e   : > { %v315_v2 = vsel %vm193_vm1, %v308_v41, 0.0 }
 0x19f   : > { %313 = vadd.xlane.f32.xlu0 %v312_v39  ;;  %321 = vadd.xlane.f32.xlu1 %v320_v40  ;;  %v316_v4 = vadd.f32 %v315_v2, %v307_v1 }
 0x1a7   : > { %317 = vadd.xlane.f32.xlu0 %v316_v4 }
 0x212   : > { %v314_v43 = vpop.xlane.xlu0 %313  ;;  %v322_v44 = vpop.xlane.xlu1 %321 }
 0x213   : > { %v323_v45 = vadd.f32 %v314_v43, %v302_v5  ;;  %v325_v46 = vadd.f32 %v322_v44, %v304_v42 }
 0x215   : > { %326 = vst.msk [vmem:[#allocation4] sm:$0xff] %vm158_vm0, %v323_v45 }
 0x216   : > { %328 = vst.msk [vmem:[#allocation4 + $0x10] sm:$0xff] %vm158_vm0, %v325_v46 }
 0x21a   : > { %v318_v7 = vpop.xlane.xlu0 %317 }
 0x21b   : > { %v324_v48 = vadd.f32 %v318_v7, %v303_v47 }
 0x21d   : > { %327 = vst.msk [vmem:[#allocation4 + $0x8] sm:$0xff] %vm158_vm0, %v324_v48 }
 0x21e PF: > { %v332_v10 = vld [vmem:[#allocation3] sm:$0xff]  ;;  %v333_v49 = vld [vmem:[#allocation3 + $0x8] sm:$0xff]  ;;  %v342_v52 = vld [vmem:[#allocation2 + $0x8] sm:$0xff]  ;;  %vm350_vm8 = vcmp.lt.s32.totalorder %v779_v9, 48  ;;  %vm351_vm9 = vcmp.lt.s32.totalorder %v781_v11, 48  ;;  %vm352_vm10 = vcmp.lt.s32.totalorder %v783_v12, 48 }
 0x21f   : > { %544 = vlog2.f32 %v332_v10  ;;  %v341_v51 = vld [vmem:[#allocation2] sm:$0xff]  ;;  %v343_v53 = vld [vmem:[#allocation2 + $0x10] sm:$0xff]  ;;  %v345_v58 = vmul.f32 20.0, %v342_v52  ;;  %vm376_vm11 = vcmask 0  }
 0x220   : > { %546 = vlog2.f32 %v333_v49  ;;  %v353_v54 = vld [vmem:[#allocation4] sm:$0xff]  ;;  %v344_v55 = vmul.f32 20.0, %v341_v51  ;;  %v355_v59 = vld [vmem:[#allocation4 + $0x10] sm:$0xff]  ;;  %v346_v62 = vmul.f32 20.0, %v343_v53 }
 0x221   : > { %v356_v63 = vmul.f32 20.0, %v353_v54  ;;  %v358_v14 = vmul.f32 20.0, %v355_v59 }
 0x224   : > { %v334_v50 = vld [vmem:[#allocation3 + $0x10] sm:$0xff]  ;;  %v354_v56 = vld [vmem:[#allocation4 + $0x8] sm:$0xff] }
 0x225   : > { %548 = vlog2.f32 %v334_v50  ;;  %v545_v57 = vpop.eup %544  ;;  %v357_v6 = vmul.f32 20.0, %v354_v56 }
 0x226   : > { %v547_v60 = vpop.eup %546  ;;  %v336_v61 = vmul.f32 0.6931472, %v545_v57 }
 0x227   : > { %v338_v3 = vmul.f32 0.6931472, %v547_v60 }
 0x228   : > { %v347_v13 = vadd.f32 %v344_v55, %v336_v61 }
 0x229   : > { %v348_v17 = vadd.f32 %v345_v58, %v338_v3 }
 0x22a   : > { %v359_v23 = vsub.f32 %v347_v13, %v356_v63 }
 0x22b   : > { %v549_v0 = vpop.eup %548  ;;  %v360_v24 = vsub.f32 %v348_v17, %v357_v6 }
 0x22c   : > { %v340_v8 = vmul.f32 0.6931472, %v549_v0  ;;  %v362_v26 = vsel %vm350_vm8, %v359_v23, 0.0 }
 0x22d   : > { %v363_v27 = vsel %vm351_vm9, %v360_v24, 0.0  ;;  %v365_v28 = vsel %vm158_vm0, %v362_v26, 0.0 }
 0x22e   : > { %v349_v19 = vadd.f32 %v346_v62, %v340_v8  ;;  %v366_v30 = vsel %vm158_vm0, %v363_v27, 0.0 }
 0x22f   : > { %v367_v31 = vadd.f32 %v366_v30, %v365_v28 }
 0x230   : > { %v361_v25 = vsub.f32 %v349_v19, %v358_v14 }
 0x232   : > { %v364_v29 = vsel %vm352_vm10, %v361_v25, 0.0 }
 0x233   : > { %v368_v32 = vsel %vm158_vm0, %v364_v29, 0.0 }
 0x234   : > { %v369_v9 = vadd.f32 %v368_v32, %v367_v31 }
 0x236   : > { %v370_v33 = vrot.slane %v369_v9, 4 }
 0x238   : > { %v371_v15 = vadd.f32 %v370_v33, %v369_v9 }
 0x23a   : > { %v372_v11 = vrot.slane %v371_v15, 2 }
 0x23c   : > { %v373_v18 = vadd.f32 %v372_v11, %v371_v15 }
 0x23e   : > { %v374_v21 = vrot.slane %v373_v18, 1 }
 0x240   : > { %v375_v12 = vadd.f32 %v374_v21, %v373_v18 }
 0x242   : > { %377 = vst.msk [vmem:[%s153_s15] sm:$0x1] %vm376_vm11, %v375_v12 }
 0x243 PF: > { %s14_s11 = sadd.s32 1, %s630_s11   ;;  %s847_s6 = smov %s614_s7 }
 0x244   : > { %p11_p3 = scmp.ge.s32.totalorder %s14_s11, 4   ;;  %s848_s7 = smov %s618_s8 }
 0x245   : > { %s849_s8 = smov %s692_s17  ;;  %s850_s9 = smov %s626_s10 }
 0x246   : > { %s851_s10 = smov %s853_s13  ;;  %13 = sbr.rel (!%p11_p3) target bundleno = 4 (0x4), region = 76 }
 0x24b   :  { %395 = vsyncpa [#allocation6], 1 }
 0x24c   :  { %397 = vsyncpa [#allocation6 + $0x1], 1 }

</bundles_post_ra>
